<compile_context>
chip_gen: v6e
topology: v6e:2x2x1
jax: 0.10.0
libtpu: 0.0.40
codegen_flags: <defaults>
</compile_context>

<pallas_src>
import jax
import jax.numpy as jnp
from jax.experimental import pallas as pl
from jax.experimental.pallas import tpu as pltpu

VMEM_LIMIT_BYTES = 32 * 1024 * 1024  # explicit scoped-VMEM budget, safe on v5e/v6e/v7x


def _round_up(x, m):
    return ((x + m - 1) // m) * m


# ------------------------------------------------------------------ kernels

def _mlp2_kernel(x_ref, w1_ref, b1_ref, w2_ref, b2_ref, o_ref):
    """y = relu(x @ W1 + b1) @ W2 + b2   (Linear -> ReLU -> Linear), one node tile."""
    h = jnp.dot(x_ref[...], w1_ref[...], preferred_element_type=jnp.float32) + b1_ref[...]
    h = jnp.maximum(h, 0.0)
    o_ref[...] = (jnp.dot(h, w2_ref[...], preferred_element_type=jnp.float32)
                  + b2_ref[...])


def _mpnn_layer_kernel(tlo_ref, thi_ref,              # scalar prefetch (SMEM)
                       dst_ref, xi_ref, xj_ref, x_ref,
                       wm1a_ref, wm1b_ref, bm1_ref, wm2_ref, bm2_ref,
                       wu1a_ref, wu1b_ref, bu1_ref, wu2_ref, bu2_ref,
                       o_ref, acc_ref):
    """One MPNNLayer over a (node-tile, edge-tile) grid point:
         msg  = message_net(cat(x_i, x_j))    per edge in this edge tile
         acc += scatter_add(msg -> dst)       restricted to this node tile
         out  = update_net(cat(x, acc))       at the last edge tile
       cat(..) @ W is rewritten as a split-weight sum (no in-kernel concat)."""
    ni = pl.program_id(0)
    ei = pl.program_id(1)
    tile_n = acc_ref.shape[0]
    tile_e = xi_ref.shape[0]
    node_lo = ni * tile_n

    @pl.when(ei == 0)
    def _():
        acc_ref[...] = jnp.zeros_like(acc_ref)

    # Edges are sorted by dst; skip edge tiles whose dst range misses this node tile.
    lo = tlo_ref[ei]
    hi = thi_ref[ei]
    hit = jnp.logical_and(lo < node_lo + tile_n, hi >= node_lo)

    @pl.when(hit)
    def _():
        # message_net: Linear(2H->H) + ReLU + Linear(H->H)
        h = (jnp.dot(xi_ref[...], wm1a_ref[...], preferred_element_type=jnp.float32)
             + jnp.dot(xj_ref[...], wm1b_ref[...], preferred_element_type=jnp.float32)
             + bm1_ref[...])
        h = jnp.maximum(h, 0.0)
        msg = jnp.dot(h, wm2_ref[...], preferred_element_type=jnp.float32) + bm2_ref[...]

        # aggr='add' within this block: block-local one-hot(dst) @ msg (exact in fp32)
        node_ids = node_lo + jax.lax.broadcasted_iota(jnp.int32, (tile_n, tile_e), 0)
        onehot = (dst_ref[...] == node_ids).astype(jnp.float32)        # [tile_n, tile_e]
        acc_ref[...] += jnp.dot(onehot, msg, preferred_element_type=jnp.float32)

    @pl.when(ei == pl.num_programs(1) - 1)
    def _():
        # update_net: Linear(2H->H) + ReLU + Linear(H->H)
        h2 = (jnp.dot(x_ref[...], wu1a_ref[...], preferred_element_type=jnp.float32)
              + jnp.dot(acc_ref[...], wu1b_ref[...], preferred_element_type=jnp.float32)
              + bu1_ref[...])
        h2 = jnp.maximum(h2, 0.0)
        o_ref[...] = (jnp.dot(h2, wu2_ref[...], preferred_element_type=jnp.float32)
                      + bu2_ref[...])


# ------------------------------------------------------------------ wrappers

def mlp2(x_pad, p, *, tile_n):
    """Tiled Pallas call for Linear->ReLU->Linear (embedder / head). Padded shapes."""
    n_pad, f_in = x_pad.shape
    f_hid = p["w1"].shape[1]
    f_out = p["w2"].shape[1]
    grid = (n_pad // tile_n,)
    return pl.pallas_call(
        _mlp2_kernel,
        out_shape=jax.ShapeDtypeStruct((n_pad, f_out), jnp.float32),
        grid=grid,
        in_specs=[
            pl.BlockSpec((tile_n, f_in), lambda i: (i, 0)),
            pl.BlockSpec((f_in, f_hid), lambda i: (0, 0)),
            pl.BlockSpec((1, f_hid), lambda i: (0, 0)),
            pl.BlockSpec((f_hid, f_out), lambda i: (0, 0)),
            pl.BlockSpec((1, f_out), lambda i: (0, 0)),
        ],
        out_specs=pl.BlockSpec((tile_n, f_out), lambda i: (i, 0)),
        compiler_params=pltpu.CompilerParams(
            dimension_semantics=("parallel",),
            vmem_limit_bytes=VMEM_LIMIT_BYTES),
    )(x_pad, p["w1"], p["b1"], p["w2"], p["b2"])


def mpnn_layer(x_pad, edges, p, *, tile_n, tile_e):
    """Tiled Pallas call for one MPNNLayer (message + add-aggregate + update)."""
    n_pad, hp = x_pad.shape
    src_s, dst_s = edges["src"], edges["dst"]        # [E_pad], sorted by dst
    tlo, thi = edges["tile_lo"], edges["tile_hi"]    # [edge_tiles] int32
    e_pad = dst_s.shape[0]
    node_tiles = n_pad // tile_n
    edge_tiles = e_pad // tile_e

    # Per-edge endpoint gather (plain-XLA glue; padded edges point at row 0 / sentinel).
    xi = jnp.take(x_pad, jnp.minimum(dst_s, n_pad - 1), axis=0)   # x_i = x[dst]
    xj = jnp.take(x_pad, src_s, axis=0)                           # x_j = x[src]
    dst2d = dst_s.reshape(1, e_pad).astype(jnp.int32)

    flops = (6 * e_pad * hp * hp            # message_net matmuls
             + 2 * e_pad * tile_n * hp      # block one-hot aggregation (approx.)
             + 6 * n_pad * hp * hp)         # update_net matmuls
    bytes_accessed = 4 * (3 * e_pad * hp + 2 * n_pad * hp + 10 * hp * hp + e_pad)
    cost = pl.CostEstimate(flops=int(flops), transcendentals=0,
                           bytes_accessed=int(bytes_accessed))

    grid_spec = pltpu.PrefetchScalarGridSpec(
        num_scalar_prefetch=2,
        grid=(node_tiles, edge_tiles),
        in_specs=[
            pl.BlockSpec((1, tile_e), lambda ni, ei, tlo, thi: (0, ei)),    # dst ids
            pl.BlockSpec((tile_e, hp), lambda ni, ei, tlo, thi: (ei, 0)),   # x_i
            pl.BlockSpec((tile_e, hp), lambda ni, ei, tlo, thi: (ei, 0)),   # x_j
            pl.BlockSpec((tile_n, hp), lambda ni, ei, tlo, thi: (ni, 0)),   # x
            # weights / biases: constant index_map -> VMEM-resident across the grid
            pl.BlockSpec((hp, hp), lambda ni, ei, tlo, thi: (0, 0)),        # wm1a
            pl.BlockSpec((hp, hp), lambda ni, ei, tlo, thi: (0, 0)),        # wm1b
            pl.BlockSpec((1, hp), lambda ni, ei, tlo, thi: (0, 0)),         # bm1
            pl.BlockSpec((hp, hp), lambda ni, ei, tlo, thi: (0, 0)),        # wm2
            pl.BlockSpec((1, hp), lambda ni, ei, tlo, thi: (0, 0)),         # bm2
            pl.BlockSpec((hp, hp), lambda ni, ei, tlo, thi: (0, 0)),        # wu1a
            pl.BlockSpec((hp, hp), lambda ni, ei, tlo, thi: (0, 0)),        # wu1b
            pl.BlockSpec((1, hp), lambda ni, ei, tlo, thi: (0, 0)),         # bu1
            pl.BlockSpec((hp, hp), lambda ni, ei, tlo, thi: (0, 0)),        # wu2
            pl.BlockSpec((1, hp), lambda ni, ei, tlo, thi: (0, 0)),         # bu2
        ],
        out_specs=pl.BlockSpec((tile_n, hp), lambda ni, ei, tlo, thi: (ni, 0)),
        scratch_shapes=[pltpu.VMEM((tile_n, hp), jnp.float32)],
    )
    return pl.pallas_call(
        _mpnn_layer_kernel,
        out_shape=jax.ShapeDtypeStruct((n_pad, hp), jnp.float32),
        grid_spec=grid_spec,
        compiler_params=pltpu.CompilerParams(
            dimension_semantics=("parallel", "arbitrary"),
            vmem_limit_bytes=VMEM_LIMIT_BYTES),
        cost_estimate=cost,
    )(tlo, thi, dst2d, xi, xj, x_pad,
      p["mw1a"], p["mw1b"], p["mb1"], p["mw2"], p["mb2"],
      p["uw1a"], p["uw1b"], p["ub1"], p["uw2"], p["ub2"])


# ------------------------------------------------------------------ padding / edge prep

def _pad2(w, rows, cols):
    return jnp.zeros((rows, cols), jnp.float32).at[:w.shape[0], :w.shape[1]].set(w)


def _pad_bias(b, cols):
    return jnp.zeros((1, cols), jnp.float32).at[0, :b.shape[0]].set(b)


def pad_params(params, fin_pad, hp, fout_pad):
    """Zero-pad parameters to lane-dense (128-multiple) shapes. Exact (adds zeros)."""
    hid = params["embedder"]["w2"].shape[1]

    def mlp(p, r_in, c_hid, c_out):
        return dict(w1=_pad2(p["w1"], r_in, c_hid), b1=_pad_bias(p["b1"], c_hid),
                    w2=_pad2(p["w2"], c_hid, c_out), b2=_pad_bias(p["b2"], c_out))

    layers = []
    for lp in params["layers"]:
        layers.append(dict(
            mw1a=_pad2(lp["mw1"][:hid], hp, hp),   # split cat(x_i, x_j) weight
            mw1b=_pad2(lp["mw1"][hid:], hp, hp),
            mb1=_pad_bias(lp["mb1"], hp),
            mw2=_pad2(lp["mw2"], hp, hp),
            mb2=_pad_bias(lp["mb2"], hp),
            uw1a=_pad2(lp["uw1"][:hid], hp, hp),   # split cat(x, agg) weight
            uw1b=_pad2(lp["uw1"][hid:], hp, hp),
            ub1=_pad_bias(lp["ub1"], hp),
            uw2=_pad2(lp["uw2"], hp, hp),
            ub2=_pad_bias(lp["ub2"], hp),
        ))
    return dict(embedder=mlp(params["embedder"], fin_pad, hp, hp),
                layers=layers,
                head=mlp(params["head"], hp, hp, fout_pad))


def prepare_edges(edge_index, n_pad, tile_e):
    """Pad edges to a multiple of tile_e, sort by dst, compute per-tile dst ranges."""
    src = edge_index[0].astype(jnp.int32)
    dst = edge_index[1].astype(jnp.int32)
    e = src.shape[0]
    e_pad = _round_up(max(e, 1), tile_e)
    pad = e_pad - e
    src_p = jnp.concatenate([src, jnp.zeros((pad,), jnp.int32)])
    dst_p = jnp.concatenate([dst, jnp.full((pad,), n_pad, jnp.int32)])  # sentinel: no node
    order = jnp.argsort(dst_p)
    src_s = src_p[order]
    dst_s = dst_p[order]
    tiles = e_pad // tile_e
    d2 = dst_s.reshape(tiles, tile_e)
    return dict(src=src_s, dst=dst_s,
                tile_lo=d2.min(axis=1).astype(jnp.int32),
                tile_hi=d2.max(axis=1).astype(jnp.int32))


# ------------------------------------------------------------------ forward

def mpnn_forward(params, x, edge_index):
    n, in_f = x.shape
    hid = params["embedder"]["w2"].shape[1]
    out_f = params["head"]["w2"].shape[1]

    hp = _round_up(hid, 128)
    fin = _round_up(in_f, 128)
    fout = _round_up(out_f, 128)

    tile_n = min(256, _round_up(n, 8))
    n_pad = _round_up(n, tile_n)
    e = edge_index.shape[1]
    tile_e = min(512, _round_up(max(e, 1), 128))

    pp = pad_params(params, fin, hp, fout)
    edges = prepare_edges(edge_index, n_pad, tile_e)
    x_pad = jnp.zeros((n_pad, fin), jnp.float32).at[:n, :in_f].set(x)

    h = mlp2(x_pad, pp["embedder"], tile_n=tile_n)
    for lp in pp["layers"]:
        h = mpnn_layer(h, edges, lp, tile_n=tile_n, tile_e=tile_e)
    y = mlp2(h, pp["head"], tile_n=tile_n)
    return y[:n, :out_f]


# ------------------------------------------------------------------ params (torch-Linear-like init)

def _linear_init(key, fan_in, fan_out):
    kw, kb = jax.random.split(key)
    bound = 1.0 / jnp.sqrt(fan_in)
    w = jax.random.uniform(kw, (fan_in, fan_out), jnp.float32, -bound, bound)
    b = jax.random.uniform(kb, (fan_out,), jnp.float32, -bound, bound)
    return w, b


def make_params(key, in_features, hidden, out_features, num_layers):
    keys = jax.random.split(key, 2 + 4 * num_layers + 2)
    it = iter(keys)

    ew1, eb1 = _linear_init(next(it), in_features, hidden)
    ew2, eb2 = _linear_init(next(it), hidden, hidden)
    embedder = dict(w1=ew1, b1=eb1, w2=ew2, b2=eb2)

    layers = []
    for _ in range(num_layers):
        mw1, mb1 = _linear_init(next(it), 2 * hidden, hidden)
        mw2, mb2 = _linear_init(next(it), hidden, hidden)
        uw1, ub1 = _linear_init(next(it), 2 * hidden, hidden)
        uw2, ub2 = _linear_init(next(it), hidden, hidden)
        layers.append(dict(mw1=mw1, mb1=mb1, mw2=mw2, mb2=mb2,
                           uw1=uw1, ub1=ub1, uw2=uw2, ub2=ub2))

    hw1, hb1 = _linear_init(next(it), hidden, hidden)
    hw2, hb2 = _linear_init(next(it), hidden, out_features)
    head = dict(w1=hw1, b1=hb1, w2=hw2, b2=hb2)

    return dict(embedder=embedder, layers=layers, head=head)


# ------------------------------------------------------------------ pure-JAX reference

def _ref_mlp2(x, p):
    return jnp.maximum(x @ p["w1"] + p["b1"], 0.0) @ p["w2"] + p["b2"]


def _ref_layer(x, edge_index, p):
    n, _ = x.shape
    src, dst = edge_index[0], edge_index[1]
    xj, xi = x[src], x[dst]
    m_in = jnp.concatenate([xi, xj], axis=-1)
    msg = jnp.maximum(m_in @ p["mw1"] + p["mb1"], 0.0) @ p["mw2"] + p["mb2"]
    agg = jax.ops.segment_sum(msg, dst, num_segments=n)
    u_in = jnp.concatenate([x, agg], axis=-1)
    return jnp.maximum(u_in @ p["uw1"] + p["ub1"], 0.0) @ p["uw2"] + p["ub2"]


def mpnn_reference(params, x, edge_index):
    x = _ref_mlp2(x, params["embedder"])
    for lp in params["layers"]:
        x = _ref_layer(x, edge_index, lp)
    return _ref_mlp2(x, params["head"])


# ------------------------------------------------------------------ main

if __name__ == "__main__":
    N, E = 16, 48
    IN_F, HID, OUT_F, NUM_LAYERS = 4, 32, 2, 2

    key = jax.random.PRNGKey(0)
    k_params, k_x, k_src, k_dst = jax.random.split(key, 4)

    params = make_params(k_params, IN_F, HID, OUT_F, NUM_LAYERS)
    x = jax.random.normal(k_x, (N, IN_F), jnp.float32)
    edge_index = jnp.stack([
        jax.random.randint(k_src, (E,), 0, N, dtype=jnp.int32),
        jax.random.randint(k_dst, (E,), 0, N, dtype=jnp.int32),
    ], axis=0)  # [2, E]: row 0 = source (x_j), row 1 = target (x_i / aggregation index)

    out = mpnn_forward(params, x, edge_index)
    out = jax.block_until_ready(out)

    ref = mpnn_reference(params, x, edge_index)
    assert out.shape == (N, OUT_F), out.shape
    assert jnp.allclose(out, ref, atol=1e-3, rtol=1e-3), float(jnp.max(jnp.abs(out - ref)))

    print("KERNEL_OK")
</pallas_src>

<mosaic_0001>
module attributes {stable_mosaic.version = 11 : i64} {
  func.func @_mlp2_kernel(%arg0: i32, %arg1: memref<16x128xf32, #tpu.memory_space<vmem>>, %arg2: memref<128x128xf32, #tpu.memory_space<vmem>>, %arg3: memref<1x128xf32, #tpu.memory_space<vmem>>, %arg4: memref<128x128xf32, #tpu.memory_space<vmem>>, %arg5: memref<1x128xf32, #tpu.memory_space<vmem>>, %arg6: memref<16x128xf32, #tpu.memory_space<vmem>>) attributes {dimension_semantics = [#tpu.dimension_semantics<parallel>], iteration_bounds = array<i64: 1>, scalar_prefetch = 0 : i64, scratch_operands = 0 : i64, tpu.core_type = #tpu.core_type<tc>, window_params = [{transform_indices = @transform_0, window_bounds = array<i64: 16, 128>}, {pipeline_mode = #tpu.pipeline_mode<synchronous>, transform_indices = @transform_1, window_bounds = array<i64: 128, 128>}, {pipeline_mode = #tpu.pipeline_mode<synchronous>, transform_indices = @transform_2, window_bounds = array<i64: 1, 128>}, {pipeline_mode = #tpu.pipeline_mode<synchronous>, transform_indices = @transform_3, window_bounds = array<i64: 128, 128>}, {pipeline_mode = #tpu.pipeline_mode<synchronous>, transform_indices = @transform_4, window_bounds = array<i64: 1, 128>}, {transform_indices = @transform_5, window_bounds = array<i64: 16, 128>}]} {
    %c0 = arith.constant 0 : index
    %c0_0 = arith.constant 0 : index
    %0 = vector.load %arg1[%c0, %c0_0] : memref<16x128xf32, #tpu.memory_space<vmem>>, vector<16x128xf32>
    %c0_1 = arith.constant 0 : index
    %c0_2 = arith.constant 0 : index
    %1 = vector.load %arg2[%c0_1, %c0_2] : memref<128x128xf32, #tpu.memory_space<vmem>>, vector<128x128xf32>
    %cst = arith.constant dense<0.000000e+00> : vector<16x128xf32>
    %2 = tpu.matmul %0, %1, %cst {dimension_numbers = #tpu.dot_dimension_numbers<[1], [0], [0], [1], [0, 0, 1, 1], [], []>} : vector<16x128xf32>, vector<128x128xf32>, vector<16x128xf32> -> vector<16x128xf32>
    %c0_3 = arith.constant 0 : index
    %c0_4 = arith.constant 0 : index
    %3 = vector.load %arg3[%c0_3, %c0_4] : memref<1x128xf32, #tpu.memory_space<vmem>>, vector<1x128xf32>
    %4 = vector.broadcast %3 : vector<1x128xf32> to vector<16x128xf32>
    %5 = arith.addf %2, %4 : vector<16x128xf32>
    %cst_5 = arith.constant 0.000000e+00 : f32
    %6 = vector.broadcast %cst_5 : f32 to vector<16x128xf32>
    %7 = arith.maximumf %5, %6 : vector<16x128xf32>
    %c0_6 = arith.constant 0 : index
    %c0_7 = arith.constant 0 : index
    %8 = vector.load %arg4[%c0_6, %c0_7] : memref<128x128xf32, #tpu.memory_space<vmem>>, vector<128x128xf32>
    %cst_8 = arith.constant dense<0.000000e+00> : vector<16x128xf32>
    %9 = tpu.matmul %7, %8, %cst_8 {dimension_numbers = #tpu.dot_dimension_numbers<[1], [0], [0], [1], [0, 0, 1, 1], [], []>} : vector<16x128xf32>, vector<128x128xf32>, vector<16x128xf32> -> vector<16x128xf32>
    %c0_9 = arith.constant 0 : index
    %c0_10 = arith.constant 0 : index
    %10 = vector.load %arg5[%c0_9, %c0_10] : memref<1x128xf32, #tpu.memory_space<vmem>>, vector<1x128xf32>
    %11 = vector.broadcast %10 : vector<1x128xf32> to vector<16x128xf32>
    %12 = arith.addf %9, %11 : vector<16x128xf32>
    %c0_11 = arith.constant 0 : index
    %c0_12 = arith.constant 0 : index
    %13 = vector.load %arg6[%c0_11, %c0_12] : memref<16x128xf32, #tpu.memory_space<vmem>>, vector<16x128xf32>
    tpu.vector_store %arg6[%c0_11, %c0_12], %12 {strides = array<i32>} : memref<16x128xf32, #tpu.memory_space<vmem>>, vector<16x128xf32>,
    return
  }
  func.func @transform_0(%arg0: i32) -> (i32, i32) {
    %c0_i32 = arith.constant 0 : i32
    %c0_i32_0 = arith.constant 0 : i32
    return %arg0, %c0_i32 : i32, i32
  }
  func.func @transform_1(%arg0: i32) -> (i32, i32) {
    %c0_i32 = arith.constant 0 : i32
    %c0_i32_0 = arith.constant 0 : i32
    %c0_i32_1 = arith.constant 0 : i32
    return %c0_i32, %c0_i32_0 : i32, i32
  }
  func.func @transform_2(%arg0: i32) -> (i32, i32) {
    %c0_i32 = arith.constant 0 : i32
    %c0_i32_0 = arith.constant 0 : i32
    %c0_i32_1 = arith.constant 0 : i32
    return %c0_i32, %c0_i32_0 : i32, i32
  }
  func.func @transform_3(%arg0: i32) -> (i32, i32) {
    %c0_i32 = arith.constant 0 : i32
    %c0_i32_0 = arith.constant 0 : i32
    %c0_i32_1 = arith.constant 0 : i32
    return %c0_i32, %c0_i32_0 : i32, i32
  }
  func.func @transform_4(%arg0: i32) -> (i32, i32) {
    %c0_i32 = arith.constant 0 : i32
    %c0_i32_0 = arith.constant 0 : i32
    %c0_i32_1 = arith.constant 0 : i32
    return %c0_i32, %c0_i32_0 : i32, i32
  }
  func.func @transform_5(%arg0: i32) -> (i32, i32) {
    %c0_i32 = arith.constant 0 : i32
    %c0_i32_0 = arith.constant 0 : i32
    return %arg0, %c0_i32 : i32, i32
  }
}

</mosaic_0001>

<bundles_post_ra>
// kernel: tpu_custom_call.1
= control target key start
LH: loop header
LB: loop body
LE: loop exit
PB: predicated region body
PF: predicated region fallthrough
CT: control target
= control target key end

     0   :  { %10 = vsyncpa [#allocation3], 0  ;;  %s548_s0 = inlined_call_operand.hbm [shape: f32[16,128], index: 0, kind: input, shape index: {}]   ;;  %s549_s1 = inlined_call_operand.hbm [shape: f32[128,128], index: 1, kind: input, shape index: {}]   ;;  %s550_s2 = inlined_call_operand.vmem [shape: f32[1,128], index: 2, kind: input, shape index: {}]   ;;  %s551_s3 = inlined_call_operand.hbm [shape: f32[128,128], index: 3, kind: input, shape index: {}]   ;;  %s552_s4 = inlined_call_operand.vmem [shape: f32[1,128], index: 4, kind: input, shape index: {}]   ;;  %s553_s5 = inlined_call_operand.hbm [shape: f32[16,128], index: 5, kind: output, shape index: {}]  }
   0x1   :  { %11 = vsyncpa [#allocation6], 0 }
   0x2   :  { %12 = vsyncpa [#allocation4], 0  ;;  %s482_s18 = smov [#allocation5]   ;;  %s483_s20 = smov [#allocation2]  }
   0x3   :  { %s30_s19 = sshll.u32 %s482_s18, 4  ;;  %s18_s21 = sshll.u32 %s483_s20, 4  ;;  %s31_s19 = int_to_ptr.vmem [resolvable:$true] %s30_s19  ;;  %s19_s21 = int_to_ptr.vmem [resolvable:$true] %s18_s21 }
   0x4   :  { %s404_s22 = scalar_lea.vmem %s31_s19, 2048  ;;  %p409_p1 = scmp.lt.s32.totalorder %s31_s19, %s31_s19 }
   0x5   :  { %p405_p0 = scmp.ne.s32.totalorder %s31_s19, %s404_s22  ;;  %p410_p2 = scmp.lt.s32.totalorder %s404_s22, %s404_s22 }
   0x7   :  { %p411_p3 = por %p410_p2, %p409_p1 }
   0x9   :  { %p412_p4 = pnand %p411_p3, %p405_p0 }
   0xb   :  { %415 = shalt.err (!%p412_p4)
}
   0xc   :  { %s484_s23 = smov 128   ;;  %s485_s24 = smov 8  }
   0xd   :  { %36 = dma.hbm_to_vmem [thread:$0]  %s549_s1, 2048, %s31_s19, [#allocation6], %s484_s23, %s484_s23, %s485_s24  }
   0xe   :  { %s424_s27 = scalar_lea.vmem %s19_s21, 256  ;;  %p429_p6 = scmp.lt.s32.totalorder %s19_s21, %s19_s21 }
   0xf   :  { %p425_p5 = scmp.ne.s32.totalorder %s19_s21, %s424_s27  ;;  %p430_p7 = scmp.lt.s32.totalorder %s424_s27, %s424_s27 }
  0x11   :  { %p431_p8 = por %p430_p7, %p429_p6 }
  0x13   :  { %p432_p9 = pnand %p431_p8, %p425_p5 }
  0x15   :  { %435 = shalt.err (!%p432_p9)
}
  0x16   :  { %24 = dma.hbm_to_vmem [thread:$0]  %s548_s0, 256, %s19_s21, [#allocation3], %s484_s23, %s484_s23, %s485_s24  }
  0x17   :  { %s486_s30 = smov [#allocation7]  }
  0x18   :  { %s44_s6 = sshll.u32 %s486_s30, 4  ;;  %s45_s6 = int_to_ptr.vmem [resolvable:$true] %s44_s6 }
  0x19   :  { %s444_s7 = scalar_lea.vmem %s45_s6, 2048  ;;  %p449_p11 = scmp.lt.s32.totalorder %s45_s6, %s45_s6 }
  0x1a   :  { %p445_p10 = scmp.ne.s32.totalorder %s45_s6, %s444_s7  ;;  %p450_p12 = scmp.lt.s32.totalorder %s444_s7, %s444_s7 }
  0x1c   :  { %p451_p13 = por %p450_p12, %p449_p11 }
  0x1e   :  { %p452_p0 = pnand %p451_p13, %p445_p10 }
  0x20   :  { %455 = shalt.err (!%p452_p0)
}
  0x21   :  { %50 = dma.hbm_to_vmem [thread:$0]  %s551_s3, 2048, %s45_s6, [#allocation6], %s484_s23, %s484_s23, %s485_s24  }
  0x22   :  { %476 = dma.done.wait [#allocation3], 256  }
  0x23   :  { %477 = vsyncadd [#allocation3], 4294967040 }
  0x24   :  { %478 = dma.done.wait [#allocation6], 4096  }
  0x25   :  { %479 = vsyncadd [#allocation6], 4294963200  ;;  %v79_v0 = vld [vmem:[#allocation5 + $0x78] sm:$0xff]  ;;  %v78_v1 = vld [vmem:[#allocation5 + $0x70] sm:$0xff]  ;;  %s487_s11 = smov [#allocation8]  }
  0x26   :  { %320 = vmatprep.subr.mxu0 %v79_v0  ;;  %v77_v2 = vld [vmem:[#allocation5 + $0x68] sm:$0xff]  ;;  %v76_v3 = vld [vmem:[#allocation5 + $0x60] sm:$0xff]  ;;  %v62_v4 = vld [vmem:[#allocation2] sm:$0xff]  ;;  %s269_s12 = sshll.u32 %s487_s11, 4  ;;  %s270_s12 = int_to_ptr.vmem [resolvable:$true] %s269_s12 }
  0x27   :  { %321 = vmatpush3.msra.mxu0 %v79_v0  ;;  %v75_v5 = vld [vmem:[#allocation5 + $0x58] sm:$0xff]  ;;  %352 = vmatprep.mubr.f32.mxu0 %v62_v4  ;;  %v178_v7 = vld [vmem:[#allocation7 + $0x70] sm:$0xff]  ;;  %v177_v9 = vld [vmem:[#allocation7 + $0x68] sm:$0xff]  ;;  %p461_p2 = scmp.lt.s32.totalorder %s270_s12, %s270_s12 }
  0x28   :  { %322 = vmatprep.subr.mxu0 %v78_v1  ;;  %v179_v6 = vld [vmem:[#allocation7 + $0x78] sm:$0xff]  ;;  %v74_v8 = vld [vmem:[#allocation5 + $0x50] sm:$0xff]  ;;  %v73_v10 = vld [vmem:[#allocation5 + $0x48] sm:$0xff] }
  0x29   :  { %323 = vmatpush3.msra.mxu0 %v78_v1  ;;  %355 = vmatprep.subr.mxu1 %v179_v6  ;;  %v176_v11 = vld [vmem:[#allocation7 + $0x60] sm:$0xff]  ;;  %v175_v13 = vld [vmem:[#allocation7 + $0x58] sm:$0xff]  ;;  %v174_v15 = vld [vmem:[#allocation7 + $0x50] sm:$0xff] }
  0x2a   :  { %324 = vmatprep.subr.mxu0 %v77_v2  ;;  %356 = vmatpush3.msra.mxu1 %v179_v6  ;;  %v72_v12 = vld [vmem:[#allocation5 + $0x40] sm:$0xff]  ;;  %v71_v14 = vld [vmem:[#allocation5 + $0x38] sm:$0xff]  ;;  %v70_v16 = vld [vmem:[#allocation5 + $0x30] sm:$0xff] }
  0x2b   :  { %325 = vmatpush3.msra.mxu0 %v77_v2  ;;  %357 = vmatprep.subr.mxu1 %v178_v7  ;;  %v173_v17 = vld [vmem:[#allocation7 + $0x48] sm:$0xff]  ;;  %v172_v19 = vld [vmem:[#allocation7 + $0x40] sm:$0xff]  ;;  %v171_v21 = vld [vmem:[#allocation7 + $0x38] sm:$0xff] }
  0x2c   :  { %326 = vmatprep.subr.mxu0 %v76_v3  ;;  %358 = vmatpush3.msra.mxu1 %v178_v7  ;;  %v69_v18 = vld [vmem:[#allocation5 + $0x28] sm:$0xff]  ;;  %v68_v20 = vld [vmem:[#allocation5 + $0x20] sm:$0xff]  ;;  %v67_v22 = vld [vmem:[#allocation5 + $0x18] sm:$0xff] }
  0x2d   :  { %327 = vmatpush3.msra.mxu0 %v76_v3  ;;  %359 = vmatprep.subr.mxu1 %v177_v9  ;;  %v170_v23 = vld [vmem:[#allocation7 + $0x30] sm:$0xff]  ;;  %v169_v25 = vld [vmem:[#allocation7 + $0x28] sm:$0xff]  ;;  %v168_v27 = vld [vmem:[#allocation7 + $0x20] sm:$0xff] }
  0x2e   :  { %328 = vmatprep.subr.mxu0 %v75_v5  ;;  %360 = vmatpush3.msra.mxu1 %v177_v9  ;;  %v66_v24 = vld [vmem:[#allocation5 + $0x10] sm:$0xff]  ;;  %v65_v26 = vld [vmem:[#allocation5 + $0x8] sm:$0xff]  ;;  %v64_v28 = vld [vmem:[#allocation5] sm:$0xff] }
  0x2f   :  { %329 = vmatpush3.msra.mxu0 %v75_v5  ;;  %361 = vmatprep.subr.mxu1 %v176_v11  ;;  %v63_v29 = vld [vmem:[#allocation2 + $0x8] sm:$0xff]  ;;  %v166_v31 = vld [vmem:[#allocation7 + $0x10] sm:$0xff]  ;;  %v165_v32 = vld [vmem:[#allocation7 + $0x8] sm:$0xff] }
  0x30   :  { %330 = vmatprep.subr.mxu0 %v74_v8  ;;  %362 = vmatpush3.msra.mxu1 %v176_v11  ;;  %v167_v30 = vld [vmem:[#allocation7 + $0x18] sm:$0xff]  ;;  %v164_v33 = vld [vmem:[#allocation7] sm:$0xff]  ;;  %v282_v34 = vld [vmem:[%s550_s2] ss:$0 sm:$0xff]  ;;  %s456_s2 = scalar_lea.vmem %s270_s12, 256 }
  0x31   :  { %331 = vmatpush3.msra.mxu0 %v74_v8  ;;  %363 = vmatprep.subr.mxu1 %v175_v13  ;;  %v283_v41 = vld [vmem:[%s552_s4] ss:$0 sm:$0xff]  ;;  %p457_p1 = scmp.ne.s32.totalorder %s270_s12, %s456_s2  ;;  %p462_p3 = scmp.lt.s32.totalorder %s456_s2, %s456_s2 }
  0x32   :  { %332 = vmatprep.subr.mxu0 %v73_v10  ;;  %364 = vmatpush3.msra.mxu1 %v175_v13 }
  0x33   :  { %333 = vmatpush3.msra.mxu0 %v73_v10  ;;  %365 = vmatprep.subr.mxu1 %v174_v15  ;;  %p463_p4 = por %p462_p3, %p461_p2 }
  0x34   :  { %334 = vmatprep.subr.mxu0 %v72_v12  ;;  %366 = vmatpush3.msra.mxu1 %v174_v15 }
  0x35   :  { %335 = vmatpush3.msra.mxu0 %v72_v12  ;;  %367 = vmatprep.subr.mxu1 %v173_v17  ;;  %p464_p5 = pnand %p463_p4, %p457_p1 }
  0x36   :  { %336 = vmatprep.subr.mxu0 %v71_v14  ;;  %368 = vmatpush3.msra.mxu1 %v173_v17 }
  0x37   :  { %337 = vmatpush3.msra.mxu0 %v71_v14  ;;  %369 = vmatprep.subr.mxu1 %v172_v19 }
  0x38   :  { %338 = vmatprep.subr.mxu0 %v70_v16  ;;  %370 = vmatpush3.msra.mxu1 %v172_v19 }
  0x39   :  { %339 = vmatpush3.msra.mxu0 %v70_v16  ;;  %371 = vmatprep.subr.mxu1 %v171_v21 }
  0x3a   :  { %340 = vmatprep.subr.mxu0 %v69_v18  ;;  %372 = vmatpush3.msra.mxu1 %v171_v21 }
  0x3b   :  { %341 = vmatpush3.msra.mxu0 %v69_v18  ;;  %373 = vmatprep.subr.mxu1 %v170_v23 }
  0x3c   :  { %342 = vmatprep.subr.mxu0 %v68_v20  ;;  %374 = vmatpush3.msra.mxu1 %v170_v23 }
  0x3d   :  { %343 = vmatpush3.msra.mxu0 %v68_v20  ;;  %375 = vmatprep.subr.mxu1 %v169_v25 }
  0x3e   :  { %344 = vmatprep.subr.mxu0 %v67_v22  ;;  %376 = vmatpush3.msra.mxu1 %v169_v25 }
  0x3f   :  { %345 = vmatpush3.msra.mxu0 %v67_v22  ;;  %377 = vmatprep.subr.mxu1 %v168_v27 }
  0x40   :  { %346 = vmatprep.subr.mxu0 %v66_v24  ;;  %378 = vmatpush3.msra.mxu1 %v168_v27 }
  0x41   :  { %347 = vmatpush3.msra.mxu0 %v66_v24  ;;  %379 = vmatprep.subr.mxu1 %v167_v30 }
  0x42   :  { %348 = vmatprep.subr.mxu0 %v65_v26  ;;  %380 = vmatpush3.msra.mxu1 %v167_v30 }
  0x43   :  { %349 = vmatpush3.msra.mxu0 %v65_v26  ;;  %381 = vmatprep.subr.mxu1 %v166_v31 }
  0x44   :  { %350 = vmatprep.subr.mxu0 %v64_v28  ;;  %382 = vmatpush3.msra.mxu1 %v166_v31 }
  0x45   :  { %351 = vmatpush3.msra.mxu0 %v64_v28  ;;  %383 = vmatprep.subr.mxu1 %v165_v32 }
  0x46   :  { %353 = vmatmul.mubr.f32.vlgmr.msra.gmra.mxu0 %v63_v29  ;;  %384 = vmatpush3.msra.mxu1 %v165_v32 }
  0x47   :  { %385 = vmatprep.subr.mxu1 %v164_v33 }
  0x48   :  { %386 = vmatpush3.msra.mxu1 %v164_v33 }
 0x106   :  { %v354_v35 = vpop.f32.mrf.mxu0 }
 0x107   :  { %v159_v36 = vadd.f32 %v354_v35, %v282_v34 }
 0x108   :  { %v153_v37 = vpop.f32.mrf.mxu0 }
 0x109   :  { %v154_v38 = vadd.f32 %v282_v34, %v153_v37  ;;  %v163_v40 = vmax.f32 %v159_v36, 0.0 }
 0x10b   :  { %v162_v39 = vmax.f32 %v154_v38, 0.0 }
 0x10d   :  { %387 = vmatprep.mubr.f32.mxu1 %v162_v39 }
 0x10e   :  { %388 = vmatmul.mubr.f32.vlgmr.msra.gmra.mxu1 %v163_v40 }
 0x1ce   :  { %v389_v42 = vpop.f32.mrf.mxu1 }
 0x1cf   :  { %v259_v43 = vadd.f32 %v389_v42, %v283_v41 }
 0x1d0   :  { %v253_v44 = vpop.f32.mrf.mxu1 }
 0x1d1   :  { %263 = vst [vmem:[#allocation8 + $0x8] sm:$0xff] %v259_v43  ;;  %v254_v45 = vadd.f32 %v283_v41, %v253_v44 }
 0x1d3   :  { %262 = vst [vmem:[#allocation8] sm:$0xff] %v254_v45 }
 0x1d4   :  { %467 = shalt.err (!%p464_p5)
}
 0x1d5   :  { %275 = dma.vmem_to_hbm [thread:$0]  %s270_s12, 256, %s553_s5, [#allocation4], %s484_s23, %s484_s23, %s485_s24  }
 0x1d6   :  { %480 = dma.done.wait [#allocation4], 256  }
 0x1d7   :  { %481 = vsyncadd [#allocation4], 4294967040 }
 0x1d8   :  { %279 = vsyncpa [#allocation3], 1 }
 0x1d9   :  { %280 = vsyncpa [#allocation6], 1 }
 0x1da   :  { %281 = vsyncpa [#allocation4], 1 }

</bundles_post_ra>
